<compile_context>
chip_gen: v5e
topology: v5e:2x2
jax: 0.10.0
libtpu: 0.0.40
codegen_flags: <defaults>
</compile_context>

<pallas_src>
import jax
import jax.numpy as jnp
from jax.experimental import pallas as pl
from jax.experimental.pallas import tpu as pltpu

_LANE = 128


def _round_up(n, m):
    return ((n + m - 1) // m) * m


def ffnn_kernel(xt_ref, w1_ref, b1_ref, w2_ref, b2_ref, w3_ref, b3_ref, o_ref):
    # fc1 + ReLU: (64, in) @ (in, tb) on the MXU, f32 accumulate / epilogue.
    h1 = jnp.dot(w1_ref[...], xt_ref[...], preferred_element_type=jnp.float32)
    h1 = jnp.maximum(h1 + b1_ref[...], 0.0)

    # dropout(p=0.2) is identity in eval/inference mode (no scaling applied).
    # TODO(synk): training-mode dropout (random mask via pltpu.prng_*) not implemented.

    # fc2 + ReLU: (32, 64) @ (64, tb) on the MXU.
    h2 = jnp.dot(w2_ref[...], h1.astype(jnp.bfloat16),
                 preferred_element_type=jnp.float32)
    h2 = jnp.maximum(h2 + b2_ref[...], 0.0)

    # fc3 (out_features=1) off the MXU: broadcast-multiply the (32, 1) weight
    # column against h2 (32, tb) on the VPU and reduce over sublanes (XLU).
    z = jnp.sum(w3_ref[...] * h2, axis=0, keepdims=True) + b3_ref[0]   # (1, tb)

    # sigmoid(z) = 1 / (1 + exp(-z)); exp on EUP, divide as EUP approx reciprocal.
    e = jnp.exp(-z)
    o_ref[...] = pl.reciprocal(1.0 + e, approx=True).astype(o_ref.dtype)


def ffnn_forward(x, w1, b1, w2, b2, w3, b3, *, block_batch=4096):
    """FFNN forward.

    x : (batch, input_size) float32
    w1: (64, input_size)  b1: (64,)     -- PyTorch nn.Linear layout (out, in)
    w2: (32, 64)          b2: (32,)
    w3: (1, 32)           b3: (1,)
    Returns (batch, 1) float32.
    """
    batch, in_features = x.shape

    # Batch tile lives on the lane axis -> multiple of 128.  For small batches
    # split into (at least) two tiles so both v7x TensorCores get work.
    if batch <= 2 * block_batch:
        tb = _round_up(max(pl.cdiv(batch, 2), 1), _LANE)
    else:
        tb = _round_up(block_batch, _LANE)
    num_tiles = pl.cdiv(batch, tb)
    padded = num_tiles * tb

    x_bf = x.astype(jnp.bfloat16)
    if padded != batch:
        x_bf = jnp.pad(x_bf, ((0, padded - batch), (0, 0)))
    xt = x_bf.T                                                # (in, padded)

    # bf16 for the MXU operand streams; biases / fc3 weight / epilogue in f32.
    w1_bf = w1.astype(jnp.bfloat16)                            # (64, in)
    w2_bf = w2.astype(jnp.bfloat16)                            # (32, 64)
    b1_col = b1.reshape(-1, 1).astype(jnp.float32)             # (64, 1)
    b2_col = b2.reshape(-1, 1).astype(jnp.float32)             # (32, 1)
    w3_col = w3.reshape(-1, 1).astype(jnp.float32)             # (32, 1) VPU path
    b3_1d = b3.reshape(-1).astype(jnp.float32)                 # (1,) scalar -> SMEM

    resident = lambda i: (0, 0)   # same block every grid step -> stays in VMEM

    out = pl.pallas_call(
        ffnn_kernel,
        out_shape=jax.ShapeDtypeStruct((1, padded), jnp.float32),
        grid=(num_tiles,),
        in_specs=[
            pl.BlockSpec((in_features, tb), lambda i: (0, i)),     # xT tile
            pl.BlockSpec(w1_bf.shape, resident),                   # W1
            pl.BlockSpec(b1_col.shape, resident),                  # b1 column
            pl.BlockSpec(w2_bf.shape, resident),                   # W2
            pl.BlockSpec(b2_col.shape, resident),                  # b2 column
            pl.BlockSpec(w3_col.shape, resident),                  # w3 column
            pl.BlockSpec(memory_space=pltpu.MemorySpace.SMEM),     # b3 scalar
        ],
        out_specs=pl.BlockSpec((1, tb), lambda i: (0, i)),         # lane-dense row
        compiler_params=pltpu.CompilerParams(
            dimension_semantics=("parallel",),
        ),
    )(xt, w1_bf, b1_col, w2_bf, b2_col, w3_col, b3_1d)

    return out[0, :batch].reshape(batch, 1)


def init_params(key, input_size):
    """Deterministic PyTorch-style (uniform +/- 1/sqrt(fan_in)) init.

    Weights are returned in PyTorch nn.Linear layout: (out_features, in_features).
    """
    def linear_init(k, fan_in, fan_out):
        kw, kb = jax.random.split(k)
        bound = 1.0 / jnp.sqrt(fan_in)
        w = jax.random.uniform(kw, (fan_out, fan_in), jnp.float32, -bound, bound)
        b = jax.random.uniform(kb, (fan_out,), jnp.float32, -bound, bound)
        return w, b

    k1, k2, k3 = jax.random.split(key, 3)
    w1, b1 = linear_init(k1, input_size, 64)
    w2, b2 = linear_init(k2, 64, 32)
    w3, b3 = linear_init(k3, 32, 1)
    return w1, b1, w2, b2, w3, b3


if __name__ == "__main__":
    key = jax.random.PRNGKey(0)
    kx, kp = jax.random.split(key)

    batch = 256
    input_size = 16
    x = jax.random.normal(kx, (batch, input_size), dtype=jnp.float32)
    params = init_params(kp, input_size)

    # batch=256 -> tb=128, grid=(2,): exercises the tiled/pipelined multi-tile path.
    out = ffnn_forward(x, *params)
    jax.block_until_ready(out)
    assert out.shape == (batch, 1)

    w1, b1, w2, b2, w3, b3 = params

    # Reference matching the kernel's numerics:
    # fc1/fc2 with bf16 operands + f32 accumulate, fc3 + sigmoid in f32.
    h1 = jnp.dot(x.astype(jnp.bfloat16), w1.T.astype(jnp.bfloat16),
                 preferred_element_type=jnp.float32)
    h1 = jnp.maximum(h1 + b1, 0.0)
    h2 = jnp.dot(h1.astype(jnp.bfloat16), w2.T.astype(jnp.bfloat16),
                 preferred_element_type=jnp.float32)
    h2 = jnp.maximum(h2 + b2, 0.0)
    z = h2 @ w3.T + b3
    ref_matched = jax.nn.sigmoid(z)
    assert jnp.allclose(out, ref_matched, atol=2e-3), "mismatch vs bf16-matched reference"

    # Full-f32 module semantics (dropout = identity at inference): loose check
    # that bf16 casting / approx reciprocal did not change the function meaningfully.
    ref_f32 = jax.nn.sigmoid(
        jnp.maximum(jnp.maximum(x @ w1.T + b1, 0.0) @ w2.T + b2, 0.0) @ w3.T + b3)
    assert jnp.allclose(out, ref_f32, atol=3e-2), "mismatch vs f32 reference"

    print("KERNEL_OK")
</pallas_src>

<mosaic_0001>
module attributes {stable_mosaic.version = 11 : i64} {
  func.func @ffnn_kernel(%arg0: i32, %arg1: memref<16x128xbf16, #tpu.memory_space<vmem>>, %arg2: memref<64x16xbf16, #tpu.memory_space<vmem>>, %arg3: memref<64x1xf32, #tpu.memory_space<vmem>>, %arg4: memref<32x64xbf16, #tpu.memory_space<vmem>>, %arg5: memref<32x1xf32, #tpu.memory_space<vmem>>, %arg6: memref<32x1xf32, #tpu.memory_space<vmem>>, %arg7: memref<1xf32, #tpu.memory_space<smem>>, %arg8: memref<1x128xf32, #tpu.memory_space<vmem>>) attributes {dimension_semantics = [#tpu.dimension_semantics<parallel>], iteration_bounds = array<i64: 2>, scalar_prefetch = 0 : i64, scratch_operands = 0 : i64, tpu.core_type = #tpu.core_type<tc>, window_params = [{transform_indices = @transform_0, window_bounds = array<i64: 16, 128>}, {pipeline_mode = #tpu.pipeline_mode<synchronous>, transform_indices = @transform_1, window_bounds = array<i64: 64, 16>}, {pipeline_mode = #tpu.pipeline_mode<synchronous>, transform_indices = @transform_2, window_bounds = array<i64: 64, 1>}, {pipeline_mode = #tpu.pipeline_mode<synchronous>, transform_indices = @transform_3, window_bounds = array<i64: 32, 64>}, {pipeline_mode = #tpu.pipeline_mode<synchronous>, transform_indices = @transform_4, window_bounds = array<i64: 32, 1>}, {pipeline_mode = #tpu.pipeline_mode<synchronous>, transform_indices = @transform_5, window_bounds = array<i64: 32, 1>}, {transform_indices = @transform_6, window_bounds = array<i64: 1>}, {transform_indices = @transform_7, window_bounds = array<i64: 1, 128>}]} {
    %c0 = arith.constant 0 : index
    %c0_0 = arith.constant 0 : index
    %0 = vector.load %arg2[%c0, %c0_0] : memref<64x16xbf16, #tpu.memory_space<vmem>>, vector<64x16xbf16>
    %c0_1 = arith.constant 0 : index
    %c0_2 = arith.constant 0 : index
    %1 = vector.load %arg1[%c0_1, %c0_2] : memref<16x128xbf16, #tpu.memory_space<vmem>>, vector<16x128xbf16>
    %cst = arith.constant dense<0.000000e+00> : vector<64x128xf32>
    %2 = tpu.matmul %0, %1, %cst {dimension_numbers = #tpu.dot_dimension_numbers<[1], [0], [0], [1], [0, 0, 1, 1], [], []>} : vector<64x16xbf16>, vector<16x128xbf16>, vector<64x128xf32> -> vector<64x128xf32>
    %c0_3 = arith.constant 0 : index
    %c0_4 = arith.constant 0 : index
    %3 = vector.load %arg3[%c0_3, %c0_4] : memref<64x1xf32, #tpu.memory_space<vmem>>, vector<64x1xf32>
    %4 = vector.broadcast %3 : vector<64x1xf32> to vector<64x128xf32>
    %5 = arith.addf %2, %4 : vector<64x128xf32>
    %cst_5 = arith.constant 0.000000e+00 : f32
    %6 = vector.broadcast %cst_5 : f32 to vector<64x128xf32>
    %7 = arith.maximumf %5, %6 : vector<64x128xf32>
    %c0_6 = arith.constant 0 : index
    %c0_7 = arith.constant 0 : index
    %8 = vector.load %arg4[%c0_6, %c0_7] : memref<32x64xbf16, #tpu.memory_space<vmem>>, vector<32x64xbf16>
    %9 = arith.truncf %7 : vector<64x128xf32> to vector<64x128xbf16>
    %cst_8 = arith.constant dense<0.000000e+00> : vector<32x128xf32>
    %10 = tpu.matmul %8, %9, %cst_8 {dimension_numbers = #tpu.dot_dimension_numbers<[1], [0], [0], [1], [0, 0, 1, 1], [], []>} : vector<32x64xbf16>, vector<64x128xbf16>, vector<32x128xf32> -> vector<32x128xf32>
    %c0_9 = arith.constant 0 : index
    %c0_10 = arith.constant 0 : index
    %11 = vector.load %arg5[%c0_9, %c0_10] : memref<32x1xf32, #tpu.memory_space<vmem>>, vector<32x1xf32>
    %12 = vector.broadcast %11 : vector<32x1xf32> to vector<32x128xf32>
    %13 = arith.addf %10, %12 : vector<32x128xf32>
    %cst_11 = arith.constant 0.000000e+00 : f32
    %14 = vector.broadcast %cst_11 : f32 to vector<32x128xf32>
    %15 = arith.maximumf %13, %14 : vector<32x128xf32>
    %c0_12 = arith.constant 0 : index
    %c0_13 = arith.constant 0 : index
    %16 = vector.load %arg6[%c0_12, %c0_13] : memref<32x1xf32, #tpu.memory_space<vmem>>, vector<32x1xf32>
    %17 = vector.broadcast %16 : vector<32x1xf32> to vector<32x128xf32>
    %18 = arith.mulf %17, %15 : vector<32x128xf32>
    %cst_14 = arith.constant dense<0.000000e+00> : vector<128xf32>
    %19 = vector.multi_reduction <add>, %18, %cst_14 [0] : vector<32x128xf32> to vector<128xf32>
    %20 = vector.shape_cast %19 : vector<128xf32> to vector<1x128xf32>
    %c0_15 = arith.constant 0 : index
    %21 = memref.load %arg7[%c0_15] : memref<1xf32, #tpu.memory_space<smem>>
    %22 = vector.broadcast %21 : f32 to vector<1x128xf32>
    %23 = arith.addf %20, %22 : vector<1x128xf32>
    %cst_16 = arith.constant 0.000000e+00 : f32
    %24 = vector.broadcast %cst_16 : f32 to vector<1x128xf32>
    %25 = arith.subf %24, %23 : vector<1x128xf32>
    %26 = math.exp %25 : vector<1x128xf32>
    %cst_17 = arith.constant 1.000000e+00 : f32
    %27 = vector.broadcast %cst_17 : f32 to vector<1x128xf32>
    %28 = arith.addf %27, %26 : vector<1x128xf32>
    %29 = tpu.reciprocal %28 {approx = true} : vector<1x128xf32> -> vector<1x128xf32>
    %c0_18 = arith.constant 0 : index
    %c0_19 = arith.constant 0 : index
    %30 = vector.load %arg8[%c0_18, %c0_19] : memref<1x128xf32, #tpu.memory_space<vmem>>, vector<1x128xf32>
    tpu.vector_store %arg8[%c0_18, %c0_19], %29 {strides = array<i32>} : memref<1x128xf32, #tpu.memory_space<vmem>>, vector<1x128xf32>,
    return
  }
  func.func @transform_0(%arg0: i32) -> (i32, i32) {
    %c0_i32 = arith.constant 0 : i32
    %c0_i32_0 = arith.constant 0 : i32
    return %c0_i32, %arg0 : i32, i32
  }
  func.func @transform_1(%arg0: i32) -> (i32, i32) {
    %c0_i32 = arith.constant 0 : i32
    %c0_i32_0 = arith.constant 0 : i32
    %c0_i32_1 = arith.constant 0 : i32
    return %c0_i32, %c0_i32_0 : i32, i32
  }
  func.func @transform_2(%arg0: i32) -> (i32, i32) {
    %c0_i32 = arith.constant 0 : i32
    %c0_i32_0 = arith.constant 0 : i32
    %c0_i32_1 = arith.constant 0 : i32
    return %c0_i32, %c0_i32_0 : i32, i32
  }
  func.func @transform_3(%arg0: i32) -> (i32, i32) {
    %c0_i32 = arith.constant 0 : i32
    %c0_i32_0 = arith.constant 0 : i32
    %c0_i32_1 = arith.constant 0 : i32
    return %c0_i32, %c0_i32_0 : i32, i32
  }
  func.func @transform_4(%arg0: i32) -> (i32, i32) {
    %c0_i32 = arith.constant 0 : i32
    %c0_i32_0 = arith.constant 0 : i32
    %c0_i32_1 = arith.constant 0 : i32
    return %c0_i32, %c0_i32_0 : i32, i32
  }
  func.func @transform_5(%arg0: i32) -> (i32, i32) {
    %c0_i32 = arith.constant 0 : i32
    %c0_i32_0 = arith.constant 0 : i32
    %c0_i32_1 = arith.constant 0 : i32
    return %c0_i32, %c0_i32_0 : i32, i32
  }
  func.func @transform_6(%arg0: i32) -> i32 {
    %c0_i32 = arith.constant 0 : i32
    %c0_i32_0 = arith.constant 0 : i32
    return %c0_i32 : i32
  }
  func.func @transform_7(%arg0: i32) -> (i32, i32) {
    %c0_i32 = arith.constant 0 : i32
    %c0_i32_0 = arith.constant 0 : i32
    return %c0_i32, %arg0 : i32, i32
  }
}

</mosaic_0001>

<bundles_post_ra>
// kernel: tpu_custom_call.1
= control target key start
LH: loop header
LB: loop body
LE: loop exit
PB: predicated region body
PF: predicated region fallthrough
CT: control target
= control target key end

     0   :  { %s1026_s0 = inlined_call_operand.vmem [shape: bf16[16,256], index: 0, kind: input, shape index: {}]   ;;  %s1027_s1 = inlined_call_operand.vmem [shape: bf16[64,16], index: 1, kind: input, shape index: {}]   ;;  %s1028_s2 = inlined_call_operand.vmem [shape: f32[64,1], index: 2, kind: input, shape index: {}]   ;;  %s1029_s3 = inlined_call_operand.vmem [shape: bf16[32,64], index: 3, kind: input, shape index: {}]   ;;  %s1030_s4 = inlined_call_operand.vmem [shape: f32[32,1], index: 4, kind: input, shape index: {}]   ;;  %s1031_s5 = inlined_call_operand.vmem [shape: f32[32,1], index: 5, kind: input, shape index: {}]   ;;  %s1032_s6 = inlined_call_operand.<no memory space> [shape: f32[1], index: 6, kind: input, shape index: {}]   ;;  %s1033_s7 = inlined_call_operand.hbm [shape: f32[1,256], index: 7, kind: output, shape index: {}]  }
   0x1   :  { %12 = sst [smem:[#allocation2]] %s1032_s6 }
   0x2   :  { %13 = vsyncpa [#allocation5], 0 }
   0x3   :  { %15 = vsyncpa [#allocation5 + $0x1], 0  ;;  %s861_s26 = smov 0   ;;  %s863_s27 = smov 0  }
   0x4   :  { %s865_s28 = smov 0   ;;  %s867_s29 = smov 0  }
   0x5 LB: > { %s650_s6 = sadd.s32 4294967295, %s815_s29   ;;  %s651_s30 = sadd.s32 4294967294, %s815_s29   ;;  %s815_s29 = sphi %s867_s29, %s1039_s29   ;;  %s811_s28 = sphi %s865_s28, %s1038_s28   ;;  %s807_s27 = sphi %s863_s27, %s1037_s27   ;;  %s803_s26 = sphi %s861_s26, %s1036_s26  }
   0x6   : > { %s884_s8 = sadd.s32 1, %s815_s29   ;;  %s28_s9 = sadd.s32 1, %s811_s28 }
   0x7   : > { %s25_s10 = ssub.s32 %s815_s29, %s884_s8  ;;  %p35_p0 = scmp.ne.s32.totalorder %s811_s28, %s807_s27 }
   0x8   : > { %p26_p1 = scmp.eq.s32.totalorder %s25_s10, 0  ;;  %p36_p2 = scmp.eq.s32.totalorder %s815_s29, 0 }
   0x9   : > { %p191_p3 = scmp.eq.s32.totalorder %s650_s6, 1  ;;  %p196_p4 = scmp.ne.s32.totalorder %s807_s27, %s803_s26 }
   0xa   : > { %s897_s11 = scalar_select %p26_p1, %s811_s28, %s28_s9  }
   0xb   : > { %p37_p5 = por %p36_p2, %p35_p0  ;;  %p899_p6 = por %p191_p3, %p35_p0 }
   0xc   : > { %p197_p7 = scmp.eq.s32.totalorder %s651_s30, 1  ;;  %p653_p9 = scmp.ge.s32.totalorder %s815_s29, 2 }
   0xe   : > { %p903_p8 = por %p197_p7, %p196_p4  ;;  %231 = sbr.rel (%p653_p9) target bundleno = 25 (0x19), region = 40 }
  0x13   : > { %234 = sbr.rel (!%p37_p5) target bundleno = 25 (0x19), region = 44  ;;  %s236_s14 = sand.u32 (%p37_p5), 1, %s811_s28  }
  0x14   : > { %s655_s15 = sshll.u32 (%p37_p5), %s815_s29, 2  ;;  %s654_s16 = sshll.u32 (%p37_p5), %s236_s14, 3 }
  0x15   : > { %s240_s19 = scalar_lea.vmem (%p37_p5), %s1026_s0, %s655_s15  ;;  %s238_s20 = scalar_lea.vmem (%p37_p5), [#allocation3], %s654_s16 }
  0x16   : > { %v257_v0 = vld [vmem:[%s240_s19] sm:$0xf] (%p37_p5)  ;;  %v259_v1 = vld [vmem:[%s240_s19 + $0x8] sm:$0xf] (%p37_p5) }
  0x17   : > { %258 = vst [vmem:[%s238_s20] sm:$0xf] (%p37_p5), %v257_v0 }
  0x18   : > { %260 = vst [vmem:[%s238_s20 + $0x4] sm:$0xf] %v259_v1 }
  0x19 PF: > { %p656_p10 = scmp.ge.s32.totalorder %s815_s29, 1  ;;  %p287_p11 = scmp.lt.s32.totalorder %s815_s29, 3 }
  0x1b   : > { %p288_p12 = pnand %p656_p10, %p287_p11 }
  0x1c   : > { %s921_s23 = sand.u32 (!%p288_p12), 1, %s807_s27   ;;  %s568_s30 = sld [smem:[#allocation2]] (!%p288_p12) }
  0x1d   : > { %291 = sbr.rel (%p288_p12) target bundleno = 402 (0x192), region = 85  ;;  %s657_s24 = sshll.u32 (!%p288_p12), %s921_s23, 3 }
  0x1e   : > { %s296_s9 = scalar_lea.vmem (!%p288_p12), [#allocation3], %s657_s24  ;;  %s586_s14 = scalar_lea.hbm (!%p288_p12), %s1033_s7, %s650_s6 }
  0x1f   : > { %s323_s15 = scalar_lea.vmem (!%p288_p12), [#allocation4], %s921_s23  ;;  %s590_s17 = sshll.u32 (!%p288_p12), %s586_s14, 4  ;;  %s591_s17 = int_to_ptr.hbm [resolvable:$true] %s590_s17 }
  0x20   : > { %s588_s16 = sshll.u32 (!%p288_p12), %s323_s15, 4  ;;  %s578_s18 = scalar_lea.sflag (!%p288_p12), [#allocation5], %s921_s23  ;;  %s589_s16 = int_to_ptr.vmem [resolvable:$true] %s588_s16 }
  0x21   : > { %s767_s19 = sshra.s32 (!%p288_p12), %s591_s17, 4  ;;  %s773_s6 = scalar_lea.hbm (!%p288_p12), %s1033_s7, 2  ;;  %s768_s19 = int_to_ptr.hbm [resolvable:$true] %s767_s19 }
  0x22   : > { %v341_v2 = vld [vmem:[%s1028_s2 + $0x30] sm:$0xff]  ;;  %v817_v3 = vmov 0   ;;  %v339_v4 = vld [vmem:[%s1028_s2 + $0x20] sm:$0xff]  ;;  %vm409_vm0 = vcmask 130048   ;;  %v342_v9 = vld [vmem:[%s1028_s2 + $0x38] sm:$0xff]  ;;  %vm501_vm1 = vcmask 523264   ;;  %p774_p2 = scmp.lt.s32.totalorder %s768_s19, %s1033_s7 }
  0x23   : > { %746 = vset.pattern.permute.xlu0 %v817_v3  ;;  %747 = vset.pattern.permute.xlu1 %v817_v3  ;;  %v698_v5 = vld [vmem:[%s296_s9] sm:$0xff]  ;;  %v696_v6 = vld [vmem:[%s1027_s1 + $0x10] sm:$0xff]  ;;  %v338_v11 = vld [vmem:[%s1028_s2 + $0x18] sm:$0xff]  ;;  %s769_s20 = scalar_lea.hbm %s768_s19, 1 }
  0x24   : > { %375 = vperm.xlu0 %746, %v341_v2   ;;  %365 = vperm.xlu1 %747, %v339_v4   ;;  %v694_v7 = vld [vmem:[%s1027_s1] sm:$0xff]  ;;  %v337_v8 = vld [vmem:[%s1028_s2 + $0x10] sm:$0xff]  ;;  %v340_v10 = vld [vmem:[%s1028_s2 + $0x28] sm:$0xff]  ;;  %p770_p13 = scmp.ne.s32.totalorder %s768_s19, %s769_s20  ;;  %p775_p3 = scmp.lt.s32.totalorder %s773_s6, %s769_s20 }
  0x25   : > { %748 = vset.pattern.permute.xlu2 %v817_v3  ;;  %701 = vmatpush.bf16.msra.mxu2 %v698_v5  ;;  %v335_v12 = vld [vmem:[%s1028_s2] sm:$0xff]  ;;  %v336_v13 = vld [vmem:[%s1028_s2 + $0x8] sm:$0xff]  ;;  %v697_v15 = vld [vmem:[%s1027_s1 + $0x18] sm:$0xff] }
  0x26   : > { %429 = vmatpush.bf16.msra.mxu0 %v698_v5  ;;  %355 = vperm.xlu2 %748, %v337_v8   ;;  %v467_v14 = vld [vmem:[%s1030_s4] sm:$0xff]  ;;  %v695_v16 = vld [vmem:[%s1027_s1 + $0x8] sm:$0xff]  ;;  %v469_v18 = vld [vmem:[%s1030_s4 + $0x10] sm:$0xff]  ;;  %p771_p0 = pnand %p770_p13, %p899_p6  ;;  %p776_p4 = por %p775_p3, %p774_p2 }
  0x27   : > { %v468_v17 = vld [vmem:[%s1030_s4 + $0x8] sm:$0xff]  ;;  %v470_v19 = vld [vmem:[%s1030_s4 + $0x18] sm:$0xff]  ;;  %v531_v20 = vld [vmem:[%s1031_s5] sm:$0xff] }
  0x28   : > { %680 = vmatmul.msk.bf16.vlgmr.msra.gmra.mxu2 %vm409_vm0, %v696_v6  ;;  %v532_v21 = vld [vmem:[%s1031_s5 + $0x8] sm:$0xff]  ;;  %v533_v22 = vld [vmem:[%s1031_s5 + $0x10] sm:$0xff]  ;;  %v534_v23 = vld [vmem:[%s1031_s5 + $0x18] sm:$0xff]  ;;  %p772_p1 = pneg %p771_p0 }
  0x29   : > { %678 = vmatmul.msk.bf16.vlgmr.msra.gmra.mxu0 %vm409_vm0, %v694_v7  ;;  %v699_v60 = vld [vmem:[%s1029_s3] sm:$0xff]  ;;  %v700_v61 = vld [vmem:[%s1029_s3 + $0x8] sm:$0xff] }
  0x2a   : > { %p777_p5 = pnand %p776_p4, %p772_p1 }
  0x2c   : > { %380 = vperm.xlu0 %746, %v342_v9   ;;  %370 = vperm.xlu1 %747, %v340_v10  }
  0x2e   : > { %360 = vperm.xlu2 %748, %v338_v11  }
  0x34   : > { %345 = vperm.xlu0 %746, %v335_v12   ;;  %350 = vperm.xlu1 %747, %v336_v13  }
  0x36   : > { %473 = vperm.xlu2 %748, %v467_v14  }
  0x38   : > { %681 = vmatmul.msk.bf16.gmra.mxu2 %vm409_vm0, %v697_v15 }
  0x39   : > { %679 = vmatmul.msk.bf16.gmra.mxu0 %vm409_vm0, %v695_v16 }
  0x3c   : > { %478 = vperm.xlu0 %746, %v468_v17   ;;  %483 = vperm.xlu1 %747, %v469_v18  }
  0x3e   : > { %488 = vperm.xlu2 %748, %v470_v19  }
  0x44   : > { %537 = vperm.xlu0 %746, %v531_v20   ;;  %542 = vperm.xlu1 %747, %v532_v21  }
  0x46   : > { %547 = vperm.xlu2 %748, %v533_v22  }
  0x4c   : > { %552 = vperm.xlu0 %746, %v534_v23  }
  0x80   : > { %v356_v32 = vpop.permute.xlu2 %355 }
  0x88   : > { %v361_v43 = vpop.permute.xlu2 %360 }
  0x90   : > { %v474_v62 = vpop.permute.xlu2 %473 }
  0x96   : > { %v376_v28 = vpop.permute.xlu0 %375  ;;  %v366_v29 = vpop.permute.xlu1 %365 }
  0x98   : > { %v489_v3 = vpop.permute.xlu2 %488 }
  0x9e   : > { %v381_v33 = vpop.permute.xlu0 %380  ;;  %v371_v34 = vpop.permute.xlu1 %370 }
  0xa0   : > { %v548_v18 = vpop.permute.xlu2 %547 }
  0xa6   : > { %v431_v24 = vpop.f32.mrf.mxu0  ;;  %v346_v48 = vpop.permute.xlu0 %345 }
  0xa7   : > { %v432_v50 = vadd.f32 %v431_v24, %v346_v48  ;;  %v351_v51 = vpop.permute.xlu1 %350 }
  0xa9   : > { %v451_v56 = vmax.f32 %v432_v50, 0.0 }
  0xab   : > { %v441_v25 = vpop.f32.mrf.mxu2 }
  0xac   : > { %v442_v40 = vadd.f32 %v441_v25, %v366_v29 }
  0xae   : > { %v433_v26 = vpop.f32.mrf.mxu0  ;;  %v455_v49 = vmax.f32 %v442_v40, 0.0  ;;  %v479_v63 = vpop.permute.xlu0 %478 }
  0xaf   : > { %v434_v52 = vadd.f32 %v433_v26, %v351_v51  ;;  %v484_v1 = vpop.permute.xlu1 %483 }
  0xb1   : > { %v452_v57 = vmax.f32 %v434_v52, 0.0 }
  0xb3   : > { %v443_v27 = vpop.f32.mrf.mxu2  ;;  %v463_v59 = vpack.c.bf16 %v452_v57, %v451_v56 }
  0xb4   : > { %v444_v37 = vadd.f32 %v443_v27, %v371_v34 }
  0xb6   : > { %v436_v30 = vpop.f32.mrf.mxu0  ;;  %v456_v44 = vmax.f32 %v444_v37, 0.0  ;;  %v538_v5 = vpop.permute.xlu0 %537 }
  0xb7   : > { %v437_v45 = vadd.f32 %v436_v30, %v356_v32  ;;  %v543_v11 = vpop.permute.xlu1 %542  ;;  %v569_v30 = vstv %s568_s30 }
  0xb8   : > { %v465_v55 = vpack.c.bf16 %v456_v44, %v455_v49 }
  0xb9   : > { %v453_v53 = vmax.f32 %v437_v45, 0.0 }
  0xbb   : > { %v446_v31 = vpop.f32.mrf.mxu2 }
  0xbc   : > { %v447_v35 = vadd.f32 %v446_v31, %v376_v28 }
  0xbe   : > { %v438_v39 = vpop.f32.mrf.mxu0  ;;  %v457_v41 = vmax.f32 %v447_v35, 0.0  ;;  %v553_v21 = vpop.permute.xlu0 %552 }
  0xbf   : > { %v439_v46 = vadd.f32 %v438_v39, %v361_v43 }
  0xc1   : > { %v454_v54 = vmax.f32 %v439_v46, 0.0 }
  0xc3   : > { %v448_v36 = vpop.f32.mrf.mxu2  ;;  %v464_v58 = vpack.c.bf16 %v454_v54, %v453_v53 }
  0xc4   : > { %v449_v38 = vadd.f32 %v448_v36, %v381_v33 }
  0xc6   : > { %v458_v42 = vmax.f32 %v449_v38, 0.0 }
  0xc8   : > { %v466_v47 = vpack.c.bf16 %v458_v42, %v457_v41 }
  0xca   : > { %512 = vmatpush.bf16.msra.mxu1 %v466_v47  ;;  %702 = vmatpush.bf16.msra.mxu3 %v466_v47 }
  0xce   : > { %513 = vmatpush.bf16.msra.mxu1 %v465_v55  ;;  %703 = vmatpush.bf16.msra.mxu3 %v465_v55 }
  0xd2   : > { %514 = vmatpush.bf16.msra.mxu1 %v464_v58  ;;  %704 = vmatpush.bf16.msra.mxu3 %v464_v58 }
  0xd6   : > { %515 = vmatpush.bf16.msra.mxu1 %v463_v59  ;;  %705 = vmatpush.bf16.msra.mxu3 %v463_v59 }
  0xd9   : > { %690 = vmatmul.msk.bf16.vlgmr.msra.gmra.mxu1 %vm501_vm1, %v699_v60  ;;  %691 = vmatmul.msk.bf16.vlgmr.msra.gmra.mxu3 %vm501_vm1, %v700_v61 }
 0x156   : > { %v517_v0 = vpop.f32.mrf.mxu1 }
 0x157   : > { %v518_v2 = vadd.f32 %v517_v0, %v474_v62 }
 0x159   : > { %v527_v7 = vmax.f32 %v518_v2, 0.0 }
 0x15b   : > { %v555_v12 = vmul.f32 %v538_v5, %v527_v7 }
 0x15c   : > { %v522_v4 = vpop.f32.mrf.mxu3 }
 0x15d   : > { %v523_v8 = vadd.f32 %v522_v4, %v484_v1 }
 0x15e   : > { %v519_v6 = vpop.f32.mrf.mxu1 }
 0x15f   : > { %v520_v9 = vadd.f32 %v519_v6, %v479_v63  ;;  %v529_v13 = vmax.f32 %v523_v8, 0.0 }
 0x161   : > { %v528_v10 = vmax.f32 %v520_v9, 0.0  ;;  %v557_v19 = vmul.f32 %v548_v18, %v529_v13 }
 0x163   : > { %v556_v14 = vmul.f32 %v543_v11, %v528_v10 }
 0x164   : > { %v524_v15 = vpop.f32.mrf.mxu3 }
 0x165   : > { %v559_v16 = vadd.f32 %v556_v14, %v555_v12  ;;  %v525_v17 = vadd.f32 %v524_v15, %v489_v3 }
 0x167   : > { %v530_v20 = vmax.f32 %v525_v17, 0.0  ;;  %v560_v23 = vadd.f32 %v559_v16, %v557_v19 }
 0x169   : > { %v558_v22 = vmul.f32 %v553_v21, %v530_v20 }
 0x16b   : > { %v561_v24 = vadd.f32 %v560_v23, %v558_v22 }
 0x16d   : > { %v562_v25 = vrot.slane %v561_v24, 4 }
 0x16f   : > { %v563_v26 = vadd.f32 %v562_v25, %v561_v24 }
 0x171   : > { %v564_v27 = vrot.slane %v563_v26, 2 }
 0x173   : > { %v565_v28 = vadd.f32 %v564_v27, %v563_v26 }
 0x175   : > { %v566_v29 = vrot.slane %v565_v28, 1 }
 0x177   : > { %v567_v31 = vadd.f32 %v566_v29, %v565_v28 }
 0x179   : > { %v570_v32 = vadd.f32 %v569_v30, %v567_v31 }
 0x17b   : > { %v571_v33 = vsub.f32 0.0, %v570_v32 }
 0x17d   : > { %v572_v34 = vmul.f32 1.442695, %v571_v33 }
 0x17f   : > { %749 = vpow2.f32 %v572_v34 }
 0x185   : > { %v750_v35 = vpop.eup %749 }
 0x186   : > { %v574_v36 = vadd.f32 1.0, %v750_v35 }
 0x188   : > { %751 = vrcp.f32 %v574_v36 }
 0x18e   : > { %v752_v37 = vpop.eup %751 }
 0x18f   : > { %576 = vst [vmem:[%s323_s15] sm:$0x1] %v752_v37 }
 0x190   : > { %780 = shalt.err (!%p777_p5)
}
 0x191   : > { %706 = dma.vmem_to_hbm [thread:$0]  (%p899_p6), %s589_s16, 16, %s591_s17, %s578_s18  }
 0x192 PF: > { %s602_s23 = sand.u32 1, %s803_s26   ;;  %p709_p7 = pnand %p653_p9, %p903_p8 }
 0x193   : > { %s603_s30 = scalar_lea.sflag [#allocation5], %s602_s23 }
 0x194   : > { %p710_p10 = pneg %p709_p7 }
 0x196   : > { %798 = dma.done.wait (%p710_p10), %s603_s30, 16  }
 0x197   : > { %800 = vsyncadd (%p710_p10), %s603_s30, 4294967280  ;;  %p18_p11 = scmp.ge.s32.totalorder %s884_s8, 4   ;;  %s1036_s26 = smov %s807_s27 }
 0x198   : > { %s1037_s27 = smov %s811_s28  ;;  %s1038_s28 = smov %s897_s11 }
 0x199   : > { %s1039_s29 = smov %s884_s8  ;;  %20 = sbr.rel (!%p18_p11) target bundleno = 5 (0x5), region = 129 }
 0x19e   :  { %608 = vsyncpa [#allocation5], 1 }
 0x19f   :  { %610 = vsyncpa [#allocation5 + $0x1], 1 }

</bundles_post_ra>
